<compile_context>
chip_gen: v7x
topology: tpu7x:2x2x1
jax: 0.10.0
libtpu: 0.0.40
codegen_flags: <defaults>
</compile_context>

<pallas_src>
import math
import functools

import jax
import jax.numpy as jnp
from jax.experimental import pallas as pl
from jax.experimental.pallas import tpu as pltpu


# --------------------------------------------------------------------------
# Per-generation VMEM budget & tile selection
# --------------------------------------------------------------------------

def _vmem_budget_bytes():
    """~75% of physical VMEM, capped at 96 MiB (v5e/v6e -> 96 MiB, v7x -> 48 MiB)."""
    cap = 128 * 1024 * 1024
    try:
        info = pltpu.get_tpu_info()
        cap = int(getattr(info, "vmem_capacity_bytes", cap) or cap)
    except Exception:
        pass
    return min((cap * 3) // 4, 96 * 1024 * 1024)


_VMEM_BUDGET = _vmem_budget_bytes()


def _pick_tile(dim, candidates):
    for c in candidates:
        if c <= dim and dim % c == 0:
            return c
    return dim


def _linear_tiles(m, n, k, itemsize):
    def fits(tm, tn, tk):
        # double-buffered x/w/b/out blocks + f32 accumulator
        vmem = 2 * (tm * tk + tk * tn + tn + tm * tn) * itemsize + tm * tn * 4
        return vmem <= _VMEM_BUDGET

    tm = _pick_tile(m, (512, 256, 128))
    tk = _pick_tile(k, (1024, 512, 256, 128))
    # Prefer the full output width (x read once); fall back to 128-multiples.
    tn = n
    for cand in [n] + [c for c in (2048, 1024, 512, 256, 128)
                       if c < n and n % c == 0]:
        tn = cand
        if fits(tm, tn, tk):
            break
    while not fits(tm, tn, tk) and tk >= 256 and k % (tk // 2) == 0:
        tk //= 2
    while not fits(tm, tn, tk) and tm >= 256 and m % (tm // 2) == 0:
        tm //= 2
    return tm, tn, tk


def _attention_tiles(S, d_model, num_heads, itemsize, with_mask):
    def fits(tq, tkv):
        blocks = 2 * (2 * tq * d_model + 2 * tkv * d_model) * itemsize  # q,o,k,v
        if with_mask:
            blocks += 2 * tq * tkv                          # int8 mask tiles
        scratch = tq * d_model * itemsize                   # head-split q
        scratch += (2 * num_heads * tq + tq * d_model) * 4  # m, l, acc (f32)
        return blocks + scratch <= _VMEM_BUDGET

    tq = _pick_tile(S, (256, 128))
    tkv = _pick_tile(S, (1024, 512, 256, 128))
    while not fits(tq, tkv) and tkv >= 256 and S % (tkv // 2) == 0:
        tkv //= 2
    while not fits(tq, tkv) and tq >= 256 and S % (tq // 2) == 0:
        tq //= 2
    return tq, tkv


# --------------------------------------------------------------------------
# Kernels
# --------------------------------------------------------------------------

def _linear_kernel(x_ref, w_ref, b_ref, o_ref, acc_ref):
    # x_ref: (tm, tk)   w_ref: (tk, tn) [pre-transposed]   b_ref: (1, tn)
    @pl.when(pl.program_id(2) == 0)
    def _init():
        acc_ref[...] = jnp.zeros_like(acc_ref)

    acc_ref[...] += jnp.dot(x_ref[...], w_ref[...],
                            preferred_element_type=jnp.float32)

    @pl.when(pl.program_id(2) == pl.num_programs(2) - 1)
    def _store():
        o_ref[...] = (acc_ref[...] + b_ref[...]).astype(o_ref.dtype)


def _split_heads(x2, num_heads, d_k):
    # (t, h*d_k) -> (h, t, d_k) via static lane slices (hidden under MXU work).
    return jnp.stack(
        [x2[:, i * d_k:(i + 1) * d_k] for i in range(num_heads)], axis=0)


def _merge_heads(x3, num_heads):
    # (h, t, d_k) -> (t, h*d_k): one lane-dense slab for a single full store.
    return jnp.concatenate([x3[i] for i in range(num_heads)], axis=-1)


def _online_softmax_step(q3, k3, v3, masked, m_sc, l_sc, acc_sc):
    # q3: (h, tq, d_k)  k3/v3: (h, tkv, d_k)  masked: (1, tq, tkv) bool or None
    s = jnp.einsum("hqd,hkd->hqk", q3, k3, preferred_element_type=jnp.float32)
    if masked is not None:
        s = jnp.where(masked, jnp.float32(-1.0e9), s)
    m_prev = m_sc[...]
    m_cur = jnp.maximum(m_prev, jnp.max(s, axis=-1, keepdims=True))
    alpha = jnp.exp(m_prev - m_cur)
    p = jnp.exp(s - m_cur)
    l_sc[...] = alpha * l_sc[...] + jnp.sum(p, axis=-1, keepdims=True)
    acc_sc[...] = alpha * acc_sc[...] + jnp.einsum(
        "hqk,hkd->hqd", p.astype(v3.dtype), v3,
        preferred_element_type=jnp.float32)
    m_sc[...] = m_cur


def _flash_causal_kernel(q_ref, k_ref, v_ref, o_ref,
                         q_sc, m_sc, l_sc, acc_sc,
                         *, num_heads, d_k, tq, tkv):
    # q_ref: (1, tq, D)  k/v_ref: (1, tkv, D)  o_ref: (1, tq, D)
    # Causal mask is generated in-kernel; fully-masked KV tiles are skipped.
    qi = pl.program_id(1)
    ki = pl.program_id(2)

    @pl.when(ki == 0)
    def _init():
        # Head-split q hoisted once per q-tile (1/sqrt(d_k) already folded
        # into w_q at parameter-prep time).
        q_sc[...] = _split_heads(q_ref[0], num_heads, d_k)
        m_sc[...] = jnp.full_like(m_sc, -jnp.inf)
        l_sc[...] = jnp.zeros_like(l_sc)
        acc_sc[...] = jnp.zeros_like(acc_sc)

    # Skip KV tiles that lie entirely in the (masked) future of this q tile.
    @pl.when(ki * tkv < (qi + 1) * tq)
    def _compute():
        k3 = _split_heads(k_ref[0], num_heads, d_k)
        v3 = _split_heads(v_ref[0], num_heads, d_k)
        row = qi * tq + jax.lax.broadcasted_iota(jnp.int32, (tq, tkv), 0)
        col = ki * tkv + jax.lax.broadcasted_iota(jnp.int32, (tq, tkv), 1)
        masked = (col > row)[None, :, :]
        _online_softmax_step(q_sc[...], k3, v3, masked, m_sc, l_sc, acc_sc)

    @pl.when(ki == pl.num_programs(2) - 1)
    def _finalize():
        inv_l = pl.reciprocal(l_sc[...], approx=True)           # EUP slot
        out = _merge_heads(acc_sc[...] * inv_l, num_heads)       # (tq, h*d_k)
        o_ref[0] = out.astype(o_ref.dtype)                       # lane-dense


def _flash_masked_kernel(q_ref, k_ref, v_ref, mask_ref, o_ref,
                         q_sc, m_sc, l_sc, acc_sc,
                         *, num_heads, d_k):
    # General (arbitrary-mask) path: mask streamed as int8 (tq, tkv) tiles.
    # Note: rows fully masked across all KV tiles yield softmax over -1e9
    # (near-uniform average of V), matching the reference semantics.
    ki = pl.program_id(2)

    @pl.when(ki == 0)
    def _init():
        q_sc[...] = _split_heads(q_ref[0], num_heads, d_k)
        m_sc[...] = jnp.full_like(m_sc, -jnp.inf)
        l_sc[...] = jnp.zeros_like(l_sc)
        acc_sc[...] = jnp.zeros_like(acc_sc)

    k3 = _split_heads(k_ref[0], num_heads, d_k)
    v3 = _split_heads(v_ref[0], num_heads, d_k)
    masked = (mask_ref[0, 0] != 0)[None, :, :]
    _online_softmax_step(q_sc[...], k3, v3, masked, m_sc, l_sc, acc_sc)

    @pl.when(ki == pl.num_programs(2) - 1)
    def _finalize():
        inv_l = pl.reciprocal(l_sc[...], approx=True)
        out = _merge_heads(acc_sc[...] * inv_l, num_heads)
        o_ref[0] = out.astype(o_ref.dtype)


# --------------------------------------------------------------------------
# Wrappers
# --------------------------------------------------------------------------

def pallas_linear(x, w, b):
    """x: [..., D_in]; w: [D_in, D_out] (pre-transposed); b: [D_out]."""
    orig_shape = x.shape
    d_in = orig_shape[-1]
    m = math.prod(orig_shape[:-1])
    x2 = x.reshape(m, d_in)
    k, n = w.shape
    assert k == d_in

    tm, tn, tk = _linear_tiles(m, n, k, jnp.dtype(x.dtype).itemsize)
    grid = (m // tm, n // tn, k // tk)

    out = pl.pallas_call(
        _linear_kernel,
        out_shape=jax.ShapeDtypeStruct((m, n), x.dtype),
        grid_spec=pltpu.PrefetchScalarGridSpec(
            num_scalar_prefetch=0,
            grid=grid,
            in_specs=[
                pl.BlockSpec((tm, tk), lambda i, j, kk: (i, kk)),
                pl.BlockSpec((tk, tn), lambda i, j, kk: (kk, j)),
                pl.BlockSpec((1, tn), lambda i, j, kk: (0, j)),
            ],
            out_specs=pl.BlockSpec((tm, tn), lambda i, j, kk: (i, j)),
            scratch_shapes=[pltpu.VMEM((tm, tn), jnp.float32)],
        ),
        compiler_params=pltpu.CompilerParams(
            dimension_semantics=("parallel", "parallel", "arbitrary"),
            vmem_limit_bytes=_VMEM_BUDGET),
    )(x2, w, b.reshape(1, n))
    return out.reshape(orig_shape[:-1] + (n,))


def pallas_flash_attention(q_arr, k_arr, v_arr, *, d_model, num_heads, causal,
                           mask_i8=None, q_col=0, k_col=0, v_col=0,
                           tiles=None):
    """Flash attention over [B, S, c*d_model] activation slabs.

    q/k/v_arr may be the same fused QKV tensor; *_col selects which
    d_model-wide column block of the last axis holds q / k / v.
    Returns the head-merged attention output [B, S, d_model].
    """
    B, S = q_arr.shape[0], q_arr.shape[1]
    assert d_model % num_heads == 0
    d_k = d_model // num_heads

    if tiles is None:
        tq, tkv = _attention_tiles(S, d_model, num_heads,
                                   jnp.dtype(q_arr.dtype).itemsize,
                                   with_mask=not causal)
    else:
        tq, tkv = tiles
    assert S % tq == 0 and S % tkv == 0
    n_q, n_kv = S // tq, S // tkv

    def q_index(b, qi, ki):
        return (b, qi, q_col)

    def kv_index(col):
        if causal:
            def idx(b, qi, ki):
                # Clamp so fully-masked (future) KV tiles are never DMA'd.
                last = (qi * tq + tq - 1) // tkv
                return (b, jnp.minimum(ki, last), col)
        else:
            def idx(b, qi, ki):
                return (b, ki, col)
        return idx

    in_specs = [
        pl.BlockSpec((1, tq, d_model), q_index),
        pl.BlockSpec((1, tkv, d_model), kv_index(k_col)),
        pl.BlockSpec((1, tkv, d_model), kv_index(v_col)),
    ]
    operands = [q_arr, k_arr, v_arr]
    if causal:
        kern = functools.partial(_flash_causal_kernel, num_heads=num_heads,
                                 d_k=d_k, tq=tq, tkv=tkv)
    else:
        assert mask_i8 is not None
        in_specs.append(
            pl.BlockSpec((1, 1, tq, tkv), lambda b, qi, ki: (b, 0, qi, ki)))
        operands.append(mask_i8)
        kern = functools.partial(_flash_masked_kernel, num_heads=num_heads,
                                 d_k=d_k)

    return pl.pallas_call(
        kern,
        out_shape=jax.ShapeDtypeStruct((B, S, d_model), q_arr.dtype),
        grid_spec=pltpu.PrefetchScalarGridSpec(
            num_scalar_prefetch=0,
            grid=(B, n_q, n_kv),
            in_specs=in_specs,
            # Output block independent of the KV axis -> resident across the
            # KV loop and flushed once per (b, q-tile).
            out_specs=pl.BlockSpec((1, tq, d_model),
                                   lambda b, qi, ki: (b, qi, 0)),
            scratch_shapes=[
                pltpu.VMEM((num_heads, tq, d_k), q_arr.dtype),   # split q
                pltpu.VMEM((num_heads, tq, 1), jnp.float32),     # running max
                pltpu.VMEM((num_heads, tq, 1), jnp.float32),     # running sum
                pltpu.VMEM((num_heads, tq, d_k), jnp.float32),   # accumulator
            ],
        ),
        compiler_params=pltpu.CompilerParams(
            dimension_semantics=("parallel", "parallel", "arbitrary"),
            vmem_limit_bytes=_VMEM_BUDGET),
    )(*operands)


def prepare_params(torch_params, h, dtype=None):
    """One-time parameter prep (kept out of the per-call path):
      * transpose torch [D_out, D_in] weights to [D_in, D_out],
      * fold the 1/sqrt(d_k) attention scale into w_q / b_q,
      * pre-fuse the q/k/v projection weights for the self-attention path,
      * optionally cast to a compute dtype (bf16 recommended on v6e/v7x).
    """
    d_model = torch_params["w_q"].shape[0]
    d_k = d_model // h
    scale = 1.0 / math.sqrt(d_k)

    def cvt(x):
        return x.astype(dtype) if dtype is not None else x

    p = {
        "w_q": cvt(torch_params["w_q"].T * scale),
        "b_q": cvt(torch_params["b_q"] * scale),
        "w_k": cvt(torch_params["w_k"].T),
        "b_k": cvt(torch_params["b_k"]),
        "w_v": cvt(torch_params["w_v"].T),
        "b_v": cvt(torch_params["b_v"]),
        "w_o": cvt(torch_params["w_o"].T),
        "b_o": cvt(torch_params["b_o"]),
    }
    p["w_qkv"] = jnp.concatenate([p["w_q"], p["w_k"], p["w_v"]], axis=1)
    p["b_qkv"] = jnp.concatenate([p["b_q"], p["b_k"], p["b_v"]], axis=0)
    return {k: jax.block_until_ready(v) for k, v in p.items()}


def multi_head_attention(prepared, q, k, v, mask, h, *, is_causal=False,
                         attn_tiles=None):
    """Forward pass of the PyTorch MultiHeadAttention module (eval / p=0).

    q, k, v: [B, S, D]; mask: [B, 1, S, S] bool (True == masked), ignored
    when is_causal=True (the causal mask is generated in-kernel).
    """
    B, S, D = q.shape
    assert D % h == 0

    # Self-attention fast path needs D % 128 == 0 so the fused [B,S,3D]
    # activation can be consumed via lane-legal d_model-wide column blocks.
    # NOTE: the `is` check relies on object identity; under jit re-tracing it
    # may silently fall back to the (still correct) 3-matmul path.
    if (q is k) and (k is v) and (D % 128 == 0):
        qkv = pallas_linear(q, prepared["w_qkv"], prepared["b_qkv"])  # [B,S,3D]
        q_arr = k_arr = v_arr = qkv
        cols = (0, 1, 2)
    else:
        q_arr = pallas_linear(q, prepared["w_q"], prepared["b_q"])
        k_arr = pallas_linear(k, prepared["w_k"], prepared["b_k"])
        v_arr = pallas_linear(v, prepared["w_v"], prepared["b_v"])
        cols = (0, 0, 0)

    if is_causal:
        mask_i8 = None
    else:
        assert mask is not None and mask.shape == (B, 1, S, S)
        mask_i8 = mask.astype(jnp.int8)     # 4x less HBM traffic than f32

    attn = pallas_flash_attention(
        q_arr, k_arr, v_arr, d_model=D, num_heads=h,
        causal=is_causal, mask_i8=mask_i8,
        q_col=cols[0], k_col=cols[1], v_col=cols[2], tiles=attn_tiles)

    # TODO(synk): attention-probability dropout not applied (eval / p=0).
    return pallas_linear(attn, prepared["w_o"], prepared["b_o"])


# --------------------------------------------------------------------------
# Pure-JAX reference (torch-layout params)
# --------------------------------------------------------------------------

def reference_mha(torch_params, q, k, v, mask, h):
    B, S, D = q.shape
    d_k = D // h

    def lin(x, w, b):
        return x @ w.T + b

    def split(x):
        return x.reshape(B, S, h, d_k).transpose(0, 2, 1, 3)

    qh = split(lin(q, torch_params["w_q"], torch_params["b_q"]))
    kh = split(lin(k, torch_params["w_k"], torch_params["b_k"]))
    vh = split(lin(v, torch_params["w_v"], torch_params["b_v"]))

    scores = jnp.einsum("bhqd,bhkd->bhqk", qh, kh) / math.sqrt(d_k)
    scores = jnp.where(mask, -1.0e9, scores)
    p = jax.nn.softmax(scores, axis=-1)
    out = jnp.einsum("bhqk,bhkd->bhqd", p, vh)
    out = out.transpose(0, 2, 1, 3).reshape(B, S, D)
    return lin(out, torch_params["w_o"], torch_params["b_o"])


# --------------------------------------------------------------------------
# main
# --------------------------------------------------------------------------

if __name__ == "__main__":
    h = 4
    d_model = 128   # multiple of 128 keeps every lane-blocked dim legal

    key = jax.random.PRNGKey(0)
    keys = jax.random.split(key, 16)

    def init_linear(kw, kb, fan_in, fan_out):
        bound = 1.0 / math.sqrt(fan_in)
        w = jax.random.uniform(kw, (fan_out, fan_in), jnp.float32, -bound, bound)
        b = jax.random.uniform(kb, (fan_out,), jnp.float32, -bound, bound)
        return w, b

    w_q, b_q = init_linear(keys[0], keys[1], d_model, d_model)
    w_k, b_k = init_linear(keys[2], keys[3], d_model, d_model)
    w_v, b_v = init_linear(keys[4], keys[5], d_model, d_model)
    w_o, b_o = init_linear(keys[6], keys[7], d_model, d_model)
    torch_params = dict(w_q=w_q, b_q=b_q, w_k=w_k, b_k=b_k,
                        w_v=w_v, b_v=b_v, w_o=w_o, b_o=b_o)

    params_f32 = prepare_params(torch_params, h)
    params_bf16 = prepare_params(torch_params, h, jnp.bfloat16)

    # ---- Test 1: cross-attention with a streamed (arbitrary) mask ----
    B, S = 2, 8
    q = jax.random.normal(keys[8], (B, S, d_model), jnp.float32)
    k = jax.random.normal(keys[9], (B, S, d_model), jnp.float32)
    v = jax.random.normal(keys[10], (B, S, d_model), jnp.float32)
    causal_s = jnp.triu(jnp.ones((S, S), dtype=bool), k=1)
    mask = jnp.broadcast_to(causal_s[None, None], (B, 1, S, S))

    out = jax.block_until_ready(
        multi_head_attention(params_f32, q, k, v, mask, h, is_causal=False))
    ref = reference_mha(torch_params, q, k, v, mask, h)
    assert out.shape == (B, S, d_model)
    assert jnp.allclose(out, ref, atol=2e-3, rtol=2e-3), \
        "cross-attention mismatch vs reference"

    # ---- Test 2: fused QKV self-attention, in-kernel causal mask,
    #      small explicit tiles to exercise the multi-KV-tile loop,
    #      tile skipping and the clamped K/V DMA index map ----
    B2, S2 = 2, 32
    x = jax.random.normal(keys[11], (B2, S2, d_model), jnp.float32)
    causal_s2 = jnp.triu(jnp.ones((S2, S2), dtype=bool), k=1)
    mask_big = jnp.broadcast_to(causal_s2[None, None], (B2, 1, S2, S2))

    out_self = jax.block_until_ready(
        multi_head_attention(params_f32, x, x, x, None, h,
                             is_causal=True, attn_tiles=(8, 8)))
    ref_self = reference_mha(torch_params, x, x, x, mask_big, h)
    assert jnp.allclose(out_self, ref_self, atol=2e-3, rtol=2e-3), \
        "causal self-attention mismatch vs reference"

    # ---- Test 3: bf16 operands (f32 softmax / MXU accumulation in-kernel) ----
    xb = x.astype(jnp.bfloat16)
    out_bf16 = jax.block_until_ready(
        multi_head_attention(params_bf16, xb, xb, xb, None, h, is_causal=True))
    assert out_bf16.dtype == jnp.bfloat16
    assert jnp.allclose(out_bf16.astype(jnp.float32), ref_self,
                        atol=8e-2, rtol=8e-2), "bf16 mismatch vs f32 reference"

    print("KERNEL_OK")
</pallas_src>

<mosaic_0001>
module attributes {stable_mosaic.version = 11 : i64} {
  func.func @_linear_kernel(%arg0: i32, %arg1: i32, %arg2: i32, %arg3: memref<16x128xf32, #tpu.memory_space<vmem>>, %arg4: memref<128x128xf32, #tpu.memory_space<vmem>>, %arg5: memref<1x128xf32, #tpu.memory_space<vmem>>, %arg6: memref<16x128xf32, #tpu.memory_space<vmem>>, %arg7: memref<16x128xf32, #tpu.memory_space<vmem>>) attributes {dimension_semantics = [#tpu.dimension_semantics<parallel>, #tpu.dimension_semantics<parallel>, #tpu.dimension_semantics<arbitrary>], iteration_bounds = array<i64: 1, 1, 1>, scalar_prefetch = 0 : i64, scratch_operands = 1 : i64, tpu.core_type = #tpu.core_type<tc>, window_params = [{transform_indices = @transform_0, window_bounds = array<i64: 16, 128>}, {transform_indices = @transform_1, window_bounds = array<i64: 128, 128>}, {transform_indices = @transform_2, window_bounds = array<i64: 1, 128>}, {transform_indices = @transform_3, window_bounds = array<i64: 16, 128>}]} {
    %c0_i32 = arith.constant 0 : i32
    %0 = arith.cmpi eq, %arg2, %c0_i32 : i32
    %1 = arith.extui %0 : i1 to i32
    %c0_i32_0 = arith.constant 0 : i32
    %2 = arith.cmpi ne, %1, %c0_i32_0 : i32
    scf.if %2 {
      %cst_10 = arith.constant 0.000000e+00 : f32
      %12 = vector.broadcast %cst_10 : f32 to vector<16x128xf32>
      %c0_11 = arith.constant 0 : index
      %c0_12 = arith.constant 0 : index
      %13 = vector.load %arg7[%c0_11, %c0_12] : memref<16x128xf32, #tpu.memory_space<vmem>>, vector<16x128xf32>
      tpu.vector_store %arg7[%c0_11, %c0_12], %12 {strides = array<i32>} : memref<16x128xf32, #tpu.memory_space<vmem>>, vector<16x128xf32>,
    } else {
    }
    %c0 = arith.constant 0 : index
    %c0_1 = arith.constant 0 : index
    %3 = vector.load %arg7[%c0, %c0_1] : memref<16x128xf32, #tpu.memory_space<vmem>>, vector<16x128xf32>
    %c0_2 = arith.constant 0 : index
    %c0_3 = arith.constant 0 : index
    %4 = vector.load %arg3[%c0_2, %c0_3] : memref<16x128xf32, #tpu.memory_space<vmem>>, vector<16x128xf32>
    %c0_4 = arith.constant 0 : index
    %c0_5 = arith.constant 0 : index
    %5 = vector.load %arg4[%c0_4, %c0_5] : memref<128x128xf32, #tpu.memory_space<vmem>>, vector<128x128xf32>
    %cst = arith.constant dense<0.000000e+00> : vector<16x128xf32>
    %6 = tpu.matmul %4, %5, %cst {dimension_numbers = #tpu.dot_dimension_numbers<[1], [0], [0], [1], [0, 0, 1, 1], [], []>} : vector<16x128xf32>, vector<128x128xf32>, vector<16x128xf32> -> vector<16x128xf32>
    %7 = arith.addf %3, %6 : vector<16x128xf32>
    %c0_6 = arith.constant 0 : index
    %c0_7 = arith.constant 0 : index
    %8 = vector.load %arg7[%c0_6, %c0_7] : memref<16x128xf32, #tpu.memory_space<vmem>>, vector<16x128xf32>
    tpu.vector_store %arg7[%c0_6, %c0_7], %7 {strides = array<i32>} : memref<16x128xf32, #tpu.memory_space<vmem>>, vector<16x128xf32>,
    %c0_i32_8 = arith.constant 0 : i32
    %9 = arith.cmpi eq, %arg2, %c0_i32_8 : i32
    %10 = arith.extui %9 : i1 to i32
    %c0_i32_9 = arith.constant 0 : i32
    %11 = arith.cmpi ne, %10, %c0_i32_9 : i32
    scf.if %11 {
      %c0_10 = arith.constant 0 : index
      %c0_11 = arith.constant 0 : index
      %12 = vector.load %arg7[%c0_10, %c0_11] : memref<16x128xf32, #tpu.memory_space<vmem>>, vector<16x128xf32>
      %c0_12 = arith.constant 0 : index
      %c0_13 = arith.constant 0 : index
      %13 = vector.load %arg5[%c0_12, %c0_13] : memref<1x128xf32, #tpu.memory_space<vmem>>, vector<1x128xf32>
      %14 = vector.broadcast %13 : vector<1x128xf32> to vector<16x128xf32>
      %15 = arith.addf %12, %14 : vector<16x128xf32>
      %c0_14 = arith.constant 0 : index
      %c0_15 = arith.constant 0 : index
      %16 = vector.load %arg6[%c0_14, %c0_15] : memref<16x128xf32, #tpu.memory_space<vmem>>, vector<16x128xf32>
      tpu.vector_store %arg6[%c0_14, %c0_15], %15 {strides = array<i32>} : memref<16x128xf32, #tpu.memory_space<vmem>>, vector<16x128xf32>,
    } else {
    }
    return
  }
  func.func @transform_0(%arg0: i32, %arg1: i32, %arg2: i32) -> (i32, i32) {
    %c0_i32 = arith.constant 0 : i32
    return %arg0, %arg2 : i32, i32
  }
  func.func @transform_1(%arg0: i32, %arg1: i32, %arg2: i32) -> (i32, i32) {
    %c0_i32 = arith.constant 0 : i32
    return %arg2, %arg1 : i32, i32
  }
  func.func @transform_2(%arg0: i32, %arg1: i32, %arg2: i32) -> (i32, i32) {
    %c0_i32 = arith.constant 0 : i32
    %c0_i32_0 = arith.constant 0 : i32
    return %c0_i32, %arg1 : i32, i32
  }
  func.func @transform_3(%arg0: i32, %arg1: i32, %arg2: i32) -> (i32, i32) {
    %c0_i32 = arith.constant 0 : i32
    return %arg0, %arg1 : i32, i32
  }
}

</mosaic_0001>

<bundles_post_ra>
// kernel: tpu_custom_call.1
= control target key start
LH: loop header
LB: loop body
LE: loop exit
PB: predicated region body
PF: predicated region fallthrough
CT: control target
= control target key end

     0   :  { %8 = vsyncpa [#allocation4], 0  ;;  %s469_s0 = inlined_call_operand.hbm [shape: f32[16,128], index: 0, kind: input, shape index: {}]   ;;  %s470_s1 = inlined_call_operand.hbm [shape: f32[128,128], index: 1, kind: input, shape index: {}]   ;;  %s471_s2 = inlined_call_operand.hbm [shape: f32[1,128], index: 2, kind: input, shape index: {}]   ;;  %s472_s3 = inlined_call_operand.hbm [shape: f32[16,128], index: 3, kind: output, shape index: {}]  }
   0x1   :  { %9 = vsyncpa [#allocation7], 0 }
   0x2   :  { %10 = vsyncpa [#allocation5], 0  ;;  %s379_s12 = smov [#allocation6]   ;;  %s380_s14 = smov [#allocation3]  }
   0x3   :  { %s28_s13 = sshll.u32 %s379_s12, 4  ;;  %s16_s15 = sshll.u32 %s380_s14, 4  ;;  %s29_s13 = int_to_ptr.vmem [resolvable:$true] %s28_s13  ;;  %s405_s15 = int_to_ptr.vmem [resolvable:$true] %s16_s15 }
   0x4   :  { %s285_s18 = scalar_lea.hbm %s470_s1, 2048 }
   0x5   :  { %p286_p0 = scmp.ne.s32.totalorder %s470_s1, %s285_s18  ;;  %p289_p1 = scmp.lt.u32.totalorder %s285_s18, %s470_s1 }
   0x7   :  { %p291_p2 = pnand %p289_p1, %p286_p0 }
   0x9   :  { %294 = shalt.err (!%p291_p2)
}
   0xa   :  { %s295_s23 = scalar_lea.vmem %s29_s13, 2048  ;;  %p300_p4 = scmp.lt.s32.totalorder %s29_s13, %s29_s13 }
   0xb   :  { %p296_p3 = scmp.ne.s32.totalorder %s29_s13, %s295_s23  ;;  %p301_p5 = scmp.lt.s32.totalorder %s295_s23, %s295_s23 }
   0xd   :  { %p302_p6 = por %p301_p5, %p300_p4 }
   0xf   :  { %p303_p7 = pnand %p302_p6, %p296_p3 }
  0x11   :  { %306 = shalt.err (!%p303_p7)
}
  0x12   :  { %s381_s24 = smov 128   ;;  %s382_s25 = smov 8  }
  0x13   :  { %34 = dma.hbm_to_vmem [thread:$0]  %s470_s1, 2048, %s29_s13, [#allocation7], %s381_s24, %s381_s24, %s382_s25  }
  0x14   :  { %s307_s30 = scalar_lea.hbm %s469_s0, 256 }
  0x15   :  { %p308_p8 = scmp.ne.s32.totalorder %s469_s0, %s307_s30  ;;  %p311_p9 = scmp.lt.u32.totalorder %s307_s30, %s469_s0 }
  0x17   :  { %p313_p10 = pnand %p311_p9, %p308_p8 }
  0x19   :  { %316 = shalt.err (!%p313_p10)
}
  0x1a   :  { %s317_s8 = scalar_lea.vmem %s405_s15, 256  ;;  %p322_p12 = scmp.lt.s32.totalorder %s405_s15, %s405_s15 }
  0x1b   :  { %p318_p11 = scmp.ne.s32.totalorder %s405_s15, %s317_s8  ;;  %p323_p13 = scmp.lt.s32.totalorder %s317_s8, %s317_s8 }
  0x1d   :  { %p324_p0 = por %p323_p13, %p322_p12 }
  0x1f   :  { %p325_p1 = pnand %p324_p0, %p318_p11 }
  0x21   :  { %328 = shalt.err (!%p325_p1)
}
  0x22   :  { %22 = dma.hbm_to_vmem [thread:$0]  %s469_s0, 256, %s405_s15, [#allocation4], %s381_s24, %s381_s24, %s382_s25  }
  0x23   :  { %s383_s10 = smov [#allocation8]   ;;  %s329_s14 = scalar_lea.hbm %s471_s2, 16 }
  0x24   :  { %s41_s11 = sshll.u32 %s383_s10, 4  ;;  %p330_p2 = scmp.ne.s32.totalorder %s471_s2, %s329_s14  ;;  %s42_s11 = int_to_ptr.vmem [resolvable:$true] %s41_s11 }
  0x25   :  { %p333_p3 = scmp.lt.u32.totalorder %s329_s14, %s471_s2 }
  0x27   :  { %p335_p4 = pnand %p333_p3, %p330_p2 }
  0x29   :  { %338 = shalt.err (!%p335_p4)
}
  0x2a   :  { %s339_s20 = scalar_lea.vmem %s42_s11, 16  ;;  %s343_s0 = scalar_lea.vmem %s42_s11, 32 }
  0x2b   :  { %p340_p5 = scmp.ne.s32.totalorder %s42_s11, %s339_s20  ;;  %p344_p6 = scmp.lt.s32.totalorder %s42_s11, %s42_s11 }
  0x2c   :  { %p345_p7 = scmp.lt.s32.totalorder %s343_s0, %s339_s20 }
  0x2e   :  { %p346_p8 = por %p345_p7, %p344_p6 }
  0x30   :  { %p347_p9 = pnand %p346_p8, %p340_p5 }
  0x32   :  { %350 = shalt.err (!%p347_p9)
}
  0x33   :  { %44 = dma.hbm_to_vmem [thread:$0]  %s471_s2, 16, %s42_s11, [#allocation7]  }
  0x34   :  { %373 = dma.done.wait [#allocation4], 256  }
  0x35   :  { %374 = vsyncadd [#allocation4], 4294967040 }
  0x36   :  { %375 = dma.done.wait [#allocation7], 2064  }
  0x37   :  { %376 = vsyncadd [#allocation7], 4294965232  ;;  %v64_v0 = vld [vmem:[#allocation6] sm:$0xff]  ;;  %v65_v1 = vld [vmem:[#allocation6 + $0x8] sm:$0xff]  ;;  %s384_s2 = smov [#allocation9]  }
  0x38   :  { %v66_v2 = vld [vmem:[#allocation6 + $0x10] sm:$0xff]  ;;  %v247_v3 = vpack.c.bf16 %v65_v1, %v64_v0  ;;  %v67_v4 = vld [vmem:[#allocation6 + $0x18] sm:$0xff]  ;;  %v68_v6 = vld [vmem:[#allocation6 + $0x20] sm:$0xff]  ;;  %s180_s22 = sshll.u32 %s384_s2, 4  ;;  %s181_s22 = int_to_ptr.vmem [resolvable:$true] %s180_s22 }
  0x39   :  { %v251_v5 = vpack.c.bf16 %v67_v4, %v66_v2  ;;  %v69_v7 = vld [vmem:[#allocation6 + $0x28] sm:$0xff]  ;;  %v62_v9 = vld [vmem:[#allocation3] sm:$0xff]  ;;  %v71_v11 = vld [vmem:[#allocation6 + $0x38] sm:$0xff]  ;;  %s351_s23 = scalar_lea.vmem %s181_s22, 256  ;;  %p356_p11 = scmp.lt.s32.totalorder %s181_s22, %s181_s22 }
  0x3a   :  { %248 = vmatprep.subr.bf16.mxu0 %v247_v3  ;;  %v255_v8 = vpack.c.bf16 %v69_v7, %v68_v6  ;;  %v70_v10 = vld [vmem:[#allocation6 + $0x30] sm:$0xff]  ;;  %244 = vmatprep.mubr.f32.mxu0 %v62_v9  ;;  %v72_v13 = vld [vmem:[#allocation6 + $0x40] sm:$0xff]  ;;  %v73_v14 = vld [vmem:[#allocation6 + $0x48] sm:$0xff]  ;;  %p352_p10 = scmp.ne.s32.totalorder %s181_s22, %s351_s23  ;;  %p357_p12 = scmp.lt.s32.totalorder %s351_s23, %s351_s23 }
  0x3b   :  { %250 = vmatpush3.bf16.msra.mxu0 %v247_v3  ;;  %v259_v12 = vpack.c.bf16 %v71_v11, %v70_v10  ;;  %v263_v15 = vpack.c.bf16 %v73_v14, %v72_v13  ;;  %v74_v16 = vld [vmem:[#allocation6 + $0x50] sm:$0xff]  ;;  %v75_v17 = vld [vmem:[#allocation6 + $0x58] sm:$0xff]  ;;  %v76_v19 = vld [vmem:[#allocation6 + $0x60] sm:$0xff] }
  0x3c   :  { %252 = vmatprep.subr.bf16.mxu0 %v251_v5  ;;  %v267_v18 = vpack.c.bf16 %v75_v17, %v74_v16  ;;  %v77_v20 = vld [vmem:[#allocation6 + $0x68] sm:$0xff]  ;;  %v78_v22 = vld [vmem:[#allocation6 + $0x70] sm:$0xff]  ;;  %v79_v23 = vld [vmem:[#allocation6 + $0x78] sm:$0xff]  ;;  %p358_p13 = por %p357_p12, %p356_p11 }
  0x3d   :  { %v271_v21 = vpack.c.bf16 %v77_v20, %v76_v19  ;;  %v275_v24 = vpack.c.bf16 %v79_v23, %v78_v22  ;;  %v63_v25 = vld [vmem:[#allocation3 + $0x8] sm:$0xff]  ;;  %v193_v26 = vld [vmem:[#allocation8] ss:$0 sm:$0xff] }
  0x3e   :  { %p359_p0 = pnand %p358_p13, %p352_p10 }
  0x3f   :  { %254 = vmatpush3.bf16.msra.mxu0 %v251_v5 }
  0x40   :  { %256 = vmatprep.subr.bf16.mxu0 %v255_v8 }
  0x43   :  { %258 = vmatpush3.bf16.msra.mxu0 %v255_v8 }
  0x44   :  { %260 = vmatprep.subr.bf16.mxu0 %v259_v12 }
  0x47   :  { %262 = vmatpush3.bf16.msra.mxu0 %v259_v12 }
  0x48   :  { %264 = vmatprep.subr.bf16.mxu0 %v263_v15 }
  0x4b   :  { %266 = vmatpush3.bf16.msra.mxu0 %v263_v15 }
  0x4c   :  { %268 = vmatprep.subr.bf16.mxu0 %v267_v18 }
  0x4f   :  { %270 = vmatpush3.bf16.msra.mxu0 %v267_v18 }
  0x50   :  { %272 = vmatprep.subr.bf16.mxu0 %v271_v21 }
  0x53   :  { %274 = vmatpush3.bf16.msra.mxu0 %v271_v21 }
  0x54   :  { %276 = vmatprep.subr.bf16.mxu0 %v275_v24 }
  0x57   :  { %278 = vmatpush3.bf16.msra.mxu0 %v275_v24 }
  0x5a   :  { %245 = vmatmul.mubr.f32.vlgmr.msra.gmra.mrb[0].mxu0 %v63_v25 }
 0x12d   :  { %v246_v27 = vpop.f32.mrb[0].mxu0 }
 0x12e   :  { %v172_v28 = vadd.f32 %v246_v27, %v193_v26  ;;  %v146_v29 = vpop.f32.mrb[1].mxu0 }
 0x12f   :  { %v171_v30 = vadd.f32 %v193_v26, %v146_v29 }
 0x130   :  { %174 = vst [vmem:[#allocation9 + $0x8] sm:$0xff] %v172_v28 }
 0x131   :  { %173 = vst [vmem:[#allocation9] sm:$0xff] %v171_v30 }
 0x132   :  { %362 = shalt.err (!%p359_p0)
}
 0x133   :  { %s363_s28 = scalar_lea.hbm %s472_s3, 256 }
 0x134   :  { %p364_p1 = scmp.ne.s32.totalorder %s472_s3, %s363_s28  ;;  %p367_p2 = scmp.lt.u32.totalorder %s363_s28, %s472_s3 }
 0x136   :  { %p369_p3 = pnand %p367_p2, %p364_p1 }
 0x138   :  { %372 = shalt.err (!%p369_p3)
}
 0x139   :  { %186 = dma.vmem_to_hbm [thread:$0]  %s181_s22, 256, %s472_s3, [#allocation5], %s381_s24, %s381_s24, %s382_s25  }
 0x13a   :  { %377 = dma.done.wait [#allocation5], 256  }
 0x13b   :  { %378 = vsyncadd [#allocation5], 4294967040 }
 0x13c   :  { %190 = vsyncpa [#allocation4], 1 }
 0x13d   :  { %191 = vsyncpa [#allocation7], 1 }
 0x13e   :  { %192 = vsyncpa [#allocation5], 1 }

</bundles_post_ra>
